<compile_context>
chip_gen: v6e
topology: v6e:2x2x1
jax: 0.10.0
libtpu: 0.0.40
codegen_flags: <defaults>
</compile_context>

<pallas_src>
import functools
import math

import jax
import jax.numpy as jnp
from jax.experimental import pallas as pl
from jax.experimental.pallas import tpu as pltpu


_CHUNK_ROWS = 16        # rows per inner chunk -> 2 f32 vregs per temporary (no spills)
_MAX_BLOCK_ROWS = 2048  # 1 MiB f32 per input block (amortizes per-grid-step overhead)


def _cdiv(a: int, b: int) -> int:
    return -(-a // b)


def _round_up(a: int, b: int) -> int:
    return _cdiv(a, b) * b


def _fold_to_vreg(v):
    """(CH, 128) -> (8, 128) by summing whole-vreg slabs (plain VPU adds, no XLU)."""
    ch = v.shape[0]
    if ch == 8:
        return v
    return jnp.sum(v.reshape(ch // 8, 8, 128), axis=0)


def _zero_input_constants(scales):
    """Per-codebook contributions of an exactly-zero input element.

    Must use the *same* sign convention as the kernel (residual >= 0 -> +scale).
    Used to analytically undo the zero padding in the finalize step.
    """
    r = 0.0
    sq_c, h_c, p_c = [], [], []
    for s in scales:
        q = s if r >= 0.0 else -s
        rn = r - q
        sq_c.append(rn * rn)
        z = 4.0 * s * r
        a = abs(z)
        t = math.exp(-a)
        u = 1.0 + t
        h_c.append(math.log(u) + a * t / u)
        p_small = t / u
        p_c.append(1.0 - p_small if z >= 0.0 else p_small)
        r = rn
    return sq_c, h_c, p_c


def _rlfq_kernel(x_ref, xh_ref, acc_ref, *, scales, chunk_rows, n_chunks, approx_recip):
    """Per grid-step body.

    x_ref  : VMEM (TR, 128)  flattened lane-packed input tile (dim id = lane % D_pad)
    xh_ref : VMEM (TR, 128)  quantized reconstruction tile
    acc_ref: VMEM (1, K+2, 8, 128) per-split resident accumulator
             [0] = sum((r - q)^2), [1] = sum(H(p)), [2+k] = per-(sublane,lane) sum of p_k
    """
    i = pl.program_id(1)

    @pl.when(i == 0)
    def _init():
        acc_ref[...] = jnp.zeros_like(acc_ref)

    def chunk_body(c, carry):
        r0 = pl.multiple_of(c * chunk_rows, chunk_rows)
        x = x_ref[pl.ds(r0, chunk_rows), :].astype(jnp.float32)     # (CH, 128)

        residual = x
        sq_t = None
        h_t = None

        # n_codebooks is a static Python int -> fully unrolled codebook chain.
        for k, s_py in enumerate(scales):
            s = jnp.float32(s_py)
            pos = residual >= 0.0                      # sign reused for q and p selects
            q = jnp.where(pos, s, -s)
            r_new = residual - q                       # reused: MSE term + next residual
            rr = r_new * r_new
            sq_t = rr if sq_t is None else sq_t + rr

            # Entropy of p = sigmoid(z), z = 4*s*residual, closed form in |z|:
            #   H = log(1 + t) + |z| * t / (1 + t),   t = exp(-|z|)
            # EUP ops per element: exp, log, approx-recip (VPU remains the binding slot;
            # on v6e re-check EUP saturation in the bundle dump before trading further).
            z = (4.0 * s_py) * residual
            a = jnp.abs(z)
            t = jnp.exp(-a)
            u = 1.0 + t
            inv_u = pl.reciprocal(u, approx=approx_recip)
            h = jnp.log(u) + (a * t) * inv_u
            h_t = h if h_t is None else h_t + h

            p_small = t * inv_u                        # sigmoid(-|z|)
            p = jnp.where(pos, inv_u, p_small)         # sigmoid(z); 1 - p_small == inv_u
            acc_ref[0, 2 + k, :, :] = acc_ref[0, 2 + k, :, :] + _fold_to_vreg(p)

            residual = r_new

        # xh == sum_k q_k == x - residual_final (no per-codebook accumulator needed)
        xh_ref[pl.ds(r0, chunk_rows), :] = (x - residual).astype(xh_ref.dtype)

        acc_ref[0, 0, :, :] = acc_ref[0, 0, :, :] + _fold_to_vreg(sq_t)
        acc_ref[0, 1, :, :] = acc_ref[0, 1, :, :] + _fold_to_vreg(h_t)
        return carry

    jax.lax.fori_loop(0, n_chunks, chunk_body, 0, unroll=False)


def residual_lfq_forward(
    x,
    *,
    n_codebooks: int,
    scale: float = 1.0,
    codebook_dim: int | None = None,
    codebook_size: int | None = None,
    scale_progression=None,
    commit_loss_weight: float = 0.1,
    codebook_loss_weight: float = 0.1,
    entropy_loss_weight: float = 1.0,
    block_rows: int | None = None,
    n_splits: int = 2,
    approx_recip: bool = True,
):
    """JAX wrapper matching ResidualLFQ.forward: returns (xh, loss, loss_breakdown)."""
    # Parameter bookkeeping mirroring ResidualLFQ.__init__ (no learnable weights).
    if codebook_size is not None and codebook_dim is not None:
        raise ValueError("Either codebook_size or codebook_dim must be provided, not both")
    if codebook_size is not None:
        codebook_dim = int(math.log2(codebook_size))
    elif codebook_dim is not None:
        codebook_size = 2 ** codebook_dim
    else:
        raise ValueError("Either codebook_size or codebook_dim must be provided")
    if x.ndim != 2 or x.shape[-1] != codebook_dim:
        raise ValueError("x must have shape [B, codebook_dim]")
    # NOTE: the PyTorch module stores `scale` but shadows it in the LFQ construction
    # loop; it is never used in forward(), so we accept it for API parity and ignore it.
    del scale

    batch, dim = int(x.shape[0]), int(x.shape[1])
    if scale_progression is None:
        scale_progression = [2.0 ** (-i) for i in range(n_codebooks)]
    scales = tuple(float(s) for s in scale_progression)
    assert len(scales) == n_codebooks

    # Pad the feature dim up to the next power of two (so it divides 128 and every lane
    # has a fixed dim id).  Zero columns/rows are corrected analytically below.
    d_pad = 1
    while d_pad < dim:
        d_pad *= 2
    if d_pad > 128:
        raise NotImplementedError("codebook_dim > 128 is not supported by this kernel")

    ch = _CHUNK_ROWS
    r_needed = _cdiv(batch * d_pad, 128)
    n_splits_eff = n_splits if (n_splits > 1 and r_needed >= n_splits * ch) else 1
    if block_rows is not None:
        tr = _round_up(int(block_rows), ch)
        tiles_per_split = max(1, _cdiv(r_needed, n_splits_eff * tr))
    else:
        tiles_per_split = max(1, _cdiv(r_needed, n_splits_eff * _MAX_BLOCK_ROWS))
        tr = _round_up(max(1, _cdiv(r_needed, n_splits_eff * tiles_per_split)), ch)
    total_tiles = n_splits_eff * tiles_per_split
    r_total = total_tiles * tr
    n_chunks = tr // ch

    # Flatten + zero-pad (single pad op; no transposes).  Tail pad is a whole number of
    # pseudo-samples because d_pad divides 128.
    tail_rows = (r_total * 128 - batch * d_pad) // d_pad
    if d_pad != dim or tail_rows:
        xp = jnp.pad(x, ((0, tail_rows), (0, d_pad - dim)))
    else:
        xp = x
    x2d = xp.reshape(r_total, 128)

    kernel = functools.partial(
        _rlfq_kernel,
        scales=scales,
        chunk_rows=ch,
        n_chunks=n_chunks,
        approx_recip=bool(approx_recip),
    )

    n_elems = r_total * 128
    cost = pl.CostEstimate(
        flops=int(18 * n_elems * n_codebooks),
        transcendentals=int(3 * n_elems * n_codebooks),
        bytes_accessed=int(2 * n_elems * x.dtype.itemsize
                           + n_splits_eff * (n_codebooks + 2) * 8 * 128 * 4),
    )

    xh2d, acc = pl.pallas_call(
        kernel,
        out_shape=(
            jax.ShapeDtypeStruct((r_total, 128), x.dtype),
            jax.ShapeDtypeStruct((n_splits_eff, n_codebooks + 2, 8, 128), jnp.float32),
        ),
        grid_spec=pltpu.PrefetchScalarGridSpec(
            num_scalar_prefetch=0,
            grid=(n_splits_eff, tiles_per_split),
            in_specs=[
                pl.BlockSpec((tr, 128), lambda c, i: (c * tiles_per_split + i, 0)),
            ],
            out_specs=(
                pl.BlockSpec((tr, 128), lambda c, i: (c * tiles_per_split + i, 0)),
                pl.BlockSpec((1, n_codebooks + 2, 8, 128), lambda c, i: (c, 0, 0, 0)),
            ),
        ),
        compiler_params=pltpu.CompilerParams(
            # Leading axis splits the batch across TensorCores (v7x megacore); the
            # inner axis carries the per-split accumulation -> "arbitrary".
            dimension_semantics=("parallel", "arbitrary"),
        ),
        cost_estimate=cost,
    )(x2d)

    # ---- tiny finalize in pure JAX (K*1024 floats per split) ----
    acc_sum = jnp.sum(acc, axis=0)                                   # (K+2, 8, 128)
    sq_raw = jnp.sum(acc_sum[0])
    ent_raw = jnp.sum(acc_sum[1])
    p_lane = jnp.sum(acc_sum[2:], axis=1)                            # (K, 128)
    p_dim = jnp.sum(p_lane.reshape(n_codebooks, 128 // d_pad, d_pad), axis=1)[:, :dim]

    # Analytic correction for the zero-padded elements (dim padding + tail padding).
    sq_c, h_c, p_c = _zero_input_constants(scales)
    n_zero = r_total * 128 - batch * dim          # all zero elements seen by the kernel
    n_pseudo = tail_rows                          # whole zero pseudo-samples (affect p_dim)
    sq_total = sq_raw - jnp.float32(n_zero * sum(sq_c))
    ent_total = ent_raw - jnp.float32(n_zero * sum(h_c))
    p_dim = p_dim - jnp.asarray(p_c, jnp.float32)[:, None] * jnp.float32(n_pseudo)

    inv_n = 1.0 / float(batch * dim)
    mse_sum = sq_total * inv_n                    # == sum_k mean((residual_k - q_k)^2)
    commit = commit_loss_weight * mse_sum
    codebook_l = codebook_loss_weight * mse_sum
    sample_ent = ent_total * inv_n                # == sum_k mean(H(p_k))
    pm = p_dim * (1.0 / float(batch))             # (K, D) per-dim batch mean of p
    eps = 1e-9
    bh = -(pm * jnp.log(pm + eps) + (1.0 - pm) * jnp.log(1.0 - pm + eps))
    batch_ent = jnp.sum(jnp.mean(bh, axis=1))
    entropy = entropy_loss_weight * (sample_ent - batch_ent)
    loss = commit + codebook_l + entropy

    # Recover xh: free contiguous reshape + slice off the padded dims / rows.
    rows_all = (r_total * 128) // d_pad
    xh = xh2d.reshape(rows_all, d_pad)[:batch, :dim]

    loss_breakdown = {
        "commit_loss": commit,
        "codebook_loss": codebook_l,
        "entropy_loss": entropy,
    }
    return xh, loss, loss_breakdown


def _reference_forward(x, scales, commit_w, codebook_w, entropy_w):
    """Pure-JAX reference of the same semantics (for correctness check)."""
    x = x.astype(jnp.float32)
    residual = x
    commit = 0.0
    codebook = 0.0
    entropy = 0.0
    eps = 1e-9
    for s in scales:
        q = jnp.where(residual >= 0.0, s, -s).astype(jnp.float32)
        r_new = residual - q
        mse = jnp.mean(r_new * r_new)
        commit = commit + commit_w * mse
        codebook = codebook + codebook_w * mse
        z = 4.0 * s * residual
        p = jax.nn.sigmoid(z)
        a = jnp.abs(z)
        t = jnp.exp(-a)
        sample_ent = jnp.mean(jnp.log(1.0 + t) + a * t / (1.0 + t))  # mean H(sigmoid(z))
        pm = jnp.mean(p, axis=0)
        bh = -(pm * jnp.log(pm + eps) + (1.0 - pm) * jnp.log(1.0 - pm + eps))
        entropy = entropy + entropy_w * (sample_ent - jnp.mean(bh))
        residual = r_new
    xh = x - residual
    return xh, commit + codebook + entropy, commit, codebook, entropy


if __name__ == "__main__":
    key = jax.random.PRNGKey(0)

    # Case 1: codebook_dim=6 (pads to d_pad=8, exercises dim + tail padding corrections),
    # small block_rows so the grid is (2 splits, 2 tiles) -> exercises the parallel axis
    # and cross-tile accumulation.
    B, D = 1000, 6
    n_codebooks = 4
    x = jax.random.normal(key, (B, D), dtype=jnp.float32)
    xh, loss, bd = residual_lfq_forward(
        x, n_codebooks=n_codebooks, scale=1.0, codebook_dim=D,
        commit_loss_weight=0.1, codebook_loss_weight=0.1, entropy_loss_weight=1.0,
        block_rows=16, n_splits=2)
    jax.block_until_ready((xh, loss, bd))

    scales = [2.0 ** (-i) for i in range(n_codebooks)]
    ref_xh, ref_loss, ref_c, ref_cb, ref_e = _reference_forward(x, scales, 0.1, 0.1, 1.0)
    assert xh.shape == (B, D)
    assert jnp.allclose(xh, ref_xh, atol=1e-5), "xh mismatch"
    assert jnp.allclose(bd["commit_loss"], ref_c, atol=1e-4), "commit mismatch"
    assert jnp.allclose(bd["codebook_loss"], ref_cb, atol=1e-4), "codebook mismatch"
    # entropy/total use an approximate EUP reciprocal -> looser tolerance
    assert jnp.allclose(bd["entropy_loss"], ref_e, atol=1e-2), "entropy mismatch"
    assert jnp.allclose(loss, ref_loss, atol=1e-2), "loss mismatch"

    # Case 2: codebook_dim=4 (no dim padding), auto block sizing, single split.
    key2 = jax.random.PRNGKey(0)
    B2, D2 = 300, 4
    x2 = jax.random.normal(key2, (B2, D2), dtype=jnp.float32)
    xh2, loss2, bd2 = residual_lfq_forward(
        x2, n_codebooks=3, scale=1.0, codebook_dim=D2,
        commit_loss_weight=0.1, codebook_loss_weight=0.1, entropy_loss_weight=1.0)
    jax.block_until_ready((xh2, loss2, bd2))
    scales2 = [2.0 ** (-i) for i in range(3)]
    r_xh2, r_loss2, r_c2, r_cb2, r_e2 = _reference_forward(x2, scales2, 0.1, 0.1, 1.0)
    assert jnp.allclose(xh2, r_xh2, atol=1e-5), "xh mismatch (case 2)"
    assert jnp.allclose(bd2["commit_loss"], r_c2, atol=1e-4), "commit mismatch (case 2)"
    assert jnp.allclose(bd2["entropy_loss"], r_e2, atol=1e-2), "entropy mismatch (case 2)"
    assert jnp.allclose(loss2, r_loss2, atol=1e-2), "loss mismatch (case 2)"

    print("KERNEL_OK")
</pallas_src>

<mosaic_0001>
module attributes {stable_mosaic.version = 11 : i64} {
  func.func @_rlfq_kernel(%arg0: i32, %arg1: i32, %arg2: memref<16x128xf32, #tpu.memory_space<vmem>>, %arg3: memref<16x128xf32, #tpu.memory_space<vmem>>, %arg4: memref<1x6x8x128xf32, #tpu.memory_space<vmem>>) attributes {dimension_semantics = [#tpu.dimension_semantics<parallel>, #tpu.dimension_semantics<arbitrary>], iteration_bounds = array<i64: 2, 2>, scalar_prefetch = 0 : i64, scratch_operands = 0 : i64, tpu.core_type = #tpu.core_type<tc>, window_params = [{transform_indices = @transform_0, window_bounds = array<i64: 16, 128>}, {transform_indices = @transform_1, window_bounds = array<i64: 16, 128>}, {transform_indices = @transform_2, window_bounds = array<i64: 1, 6, 8, 128>}]} {
    %c0_i32 = arith.constant 0 : i32
    %0 = arith.cmpi eq, %arg1, %c0_i32 : i32
    %1 = arith.extui %0 : i1 to i32
    %c0_i32_0 = arith.constant 0 : i32
    %2 = arith.cmpi ne, %1, %c0_i32_0 : i32
    scf.if %2 {
      %cst_79 = arith.constant 0.000000e+00 : f32
      %156 = vector.broadcast %cst_79 : f32 to vector<1x6x8x128xf32>
      %c0_80 = arith.constant 0 : index
      %c0_81 = arith.constant 0 : index
      %c0_82 = arith.constant 0 : index
      %c0_83 = arith.constant 0 : index
      %157 = vector.load %arg4[%c0_80, %c0_81, %c0_82, %c0_83] : memref<1x6x8x128xf32, #tpu.memory_space<vmem>>, vector<1x6x8x128xf32>
      tpu.vector_store %arg4[%c0_80, %c0_81, %c0_82, %c0_83], %156 {strides = array<i32>} : memref<1x6x8x128xf32, #tpu.memory_space<vmem>>, vector<1x6x8x128xf32>,
    } else {
    }
    %c0_i32_1 = arith.constant 0 : i32
    %c16_i32 = arith.constant 16 : i32
    %3 = arith.muli %c0_i32_1, %c16_i32 : i32
    %4 = tpu.assume_multiple %3, 16 : i32
    %5 = arith.index_cast %4 : i32 to index
    %c0 = arith.constant 0 : index
    %6 = vector.load %arg2[%5, %c0] : memref<16x128xf32, #tpu.memory_space<vmem>>, vector<16x128xf32>
    %cst = arith.constant 0.000000e+00 : f32
    %7 = vector.broadcast %cst : f32 to vector<16x128xf32>
    %8 = arith.cmpf oge, %6, %7 : vector<16x128xf32>
    %cst_2 = arith.constant 0.000000e+00 : f32
    %cst_3 = arith.constant 1.000000e+00 : f32
    %9 = arith.subf %cst_2, %cst_3 : f32
    %cst_4 = arith.constant 1.000000e+00 : f32
    %10 = vector.broadcast %cst_4 : f32 to vector<16x128xf32>
    %11 = vector.broadcast %9 : f32 to vector<16x128xf32>
    %12 = arith.select %8, %10, %11 : vector<16x128xi1>, vector<16x128xf32>
    %13 = arith.subf %6, %12 : vector<16x128xf32>
    %14 = arith.mulf %13, %13 : vector<16x128xf32>
    %cst_5 = arith.constant 4.000000e+00 : f32
    %15 = vector.broadcast %cst_5 : f32 to vector<16x128xf32>
    %16 = arith.mulf %15, %6 : vector<16x128xf32>
    %17 = math.absf %16 : vector<16x128xf32>
    %cst_6 = arith.constant 0.000000e+00 : f32
    %18 = vector.broadcast %cst_6 : f32 to vector<16x128xf32>
    %19 = arith.subf %18, %17 : vector<16x128xf32>
    %20 = math.exp %19 : vector<16x128xf32>
    %cst_7 = arith.constant 1.000000e+00 : f32
    %21 = vector.broadcast %cst_7 : f32 to vector<16x128xf32>
    %22 = arith.addf %21, %20 : vector<16x128xf32>
    %23 = tpu.reciprocal %22 {approx = true} : vector<16x128xf32> -> vector<16x128xf32>
    %24 = math.log %22 : vector<16x128xf32>
    %25 = arith.mulf %17, %20 : vector<16x128xf32>
    %26 = arith.mulf %25, %23 : vector<16x128xf32>
    %27 = arith.addf %24, %26 : vector<16x128xf32>
    %28 = arith.mulf %20, %23 : vector<16x128xf32>
    %29 = arith.select %8, %23, %28 : vector<16x128xi1>, vector<16x128xf32>
    %c0_8 = arith.constant 0 : index
    %c2 = arith.constant 2 : index
    %c0_9 = arith.constant 0 : index
    %c0_10 = arith.constant 0 : index
    %30 = vector.load %arg4[%c0_8, %c2, %c0_9, %c0_10] : memref<1x6x8x128xf32, #tpu.memory_space<vmem>>, vector<1x1x8x128xf32>
    %31 = vector.shape_cast %30 : vector<1x1x8x128xf32> to vector<8x128xf32>
    %32 = vector.shape_cast %29 : vector<16x128xf32> to vector<2x8x128xf32>
    %cst_11 = arith.constant dense<0.000000e+00> : vector<8x128xf32>
    %33 = vector.multi_reduction <add>, %32, %cst_11 [0] : vector<2x8x128xf32> to vector<8x128xf32>
    %34 = arith.addf %31, %33 : vector<8x128xf32>
    %c0_12 = arith.constant 0 : index
    %c2_13 = arith.constant 2 : index
    %c0_14 = arith.constant 0 : index
    %c0_15 = arith.constant 0 : index
    %35 = vector.load %arg4[%c0_12, %c2_13, %c0_14, %c0_15] : memref<1x6x8x128xf32, #tpu.memory_space<vmem>>, vector<1x1x8x128xf32>
    %36 = vector.shape_cast %35 : vector<1x1x8x128xf32> to vector<8x128xf32>
    %37 = vector.shape_cast %34 : vector<8x128xf32> to vector<1x1x8x128xf32>
    tpu.vector_store %arg4[%c0_12, %c2_13, %c0_14, %c0_15], %37 {strides = array<i32>} : memref<1x6x8x128xf32, #tpu.memory_space<vmem>>, vector<1x1x8x128xf32>,
    %cst_16 = arith.constant 0.000000e+00 : f32
    %38 = vector.broadcast %cst_16 : f32 to vector<16x128xf32>
    %39 = arith.cmpf oge, %13, %38 : vector<16x128xf32>
    %cst_17 = arith.constant 0.000000e+00 : f32
    %cst_18 = arith.constant 5.000000e-01 : f32
    %40 = arith.subf %cst_17, %cst_18 : f32
    %cst_19 = arith.constant 5.000000e-01 : f32
    %41 = vector.broadcast %cst_19 : f32 to vector<16x128xf32>
    %42 = vector.broadcast %40 : f32 to vector<16x128xf32>
    %43 = arith.select %39, %41, %42 : vector<16x128xi1>, vector<16x128xf32>
    %44 = arith.subf %13, %43 : vector<16x128xf32>
    %45 = arith.mulf %44, %44 : vector<16x128xf32>
    %46 = arith.addf %14, %45 : vector<16x128xf32>
    %cst_20 = arith.constant 2.000000e+00 : f32
    %47 = vector.broadcast %cst_20 : f32 to vector<16x128xf32>
    %48 = arith.mulf %47, %13 : vector<16x128xf32>
    %49 = math.absf %48 : vector<16x128xf32>
    %cst_21 = arith.constant 0.000000e+00 : f32
    %50 = vector.broadcast %cst_21 : f32 to vector<16x128xf32>
    %51 = arith.subf %50, %49 : vector<16x128xf32>
    %52 = math.exp %51 : vector<16x128xf32>
    %cst_22 = arith.constant 1.000000e+00 : f32
    %53 = vector.broadcast %cst_22 : f32 to vector<16x128xf32>
    %54 = arith.addf %53, %52 : vector<16x128xf32>
    %55 = tpu.reciprocal %54 {approx = true} : vector<16x128xf32> -> vector<16x128xf32>
    %56 = math.log %54 : vector<16x128xf32>
    %57 = arith.mulf %49, %52 : vector<16x128xf32>
    %58 = arith.mulf %57, %55 : vector<16x128xf32>
    %59 = arith.addf %56, %58 : vector<16x128xf32>
    %60 = arith.addf %27, %59 : vector<16x128xf32>
    %61 = arith.mulf %52, %55 : vector<16x128xf32>
    %62 = arith.select %39, %55, %61 : vector<16x128xi1>, vector<16x128xf32>
    %c0_23 = arith.constant 0 : index
    %c3 = arith.constant 3 : index
    %c0_24 = arith.constant 0 : index
    %c0_25 = arith.constant 0 : index
    %63 = vector.load %arg4[%c0_23, %c3, %c0_24, %c0_25] : memref<1x6x8x128xf32, #tpu.memory_space<vmem>>, vector<1x1x8x128xf32>
    %64 = vector.shape_cast %63 : vector<1x1x8x128xf32> to vector<8x128xf32>
    %65 = vector.shape_cast %62 : vector<16x128xf32> to vector<2x8x128xf32>
    %cst_26 = arith.constant dense<0.000000e+00> : vector<8x128xf32>
    %66 = vector.multi_reduction <add>, %65, %cst_26 [0] : vector<2x8x128xf32> to vector<8x128xf32>
    %67 = arith.addf %64, %66 : vector<8x128xf32>
    %c0_27 = arith.constant 0 : index
    %c3_28 = arith.constant 3 : index
    %c0_29 = arith.constant 0 : index
    %c0_30 = arith.constant 0 : index
    %68 = vector.load %arg4[%c0_27, %c3_28, %c0_29, %c0_30] : memref<1x6x8x128xf32, #tpu.memory_space<vmem>>, vector<1x1x8x128xf32>
    %69 = vector.shape_cast %68 : vector<1x1x8x128xf32> to vector<8x128xf32>
    %70 = vector.shape_cast %67 : vector<8x128xf32> to vector<1x1x8x128xf32>
    tpu.vector_store %arg4[%c0_27, %c3_28, %c0_29, %c0_30], %70 {strides = array<i32>} : memref<1x6x8x128xf32, #tpu.memory_space<vmem>>, vector<1x1x8x128xf32>,
    %cst_31 = arith.constant 0.000000e+00 : f32
    %71 = vector.broadcast %cst_31 : f32 to vector<16x128xf32>
    %72 = arith.cmpf oge, %44, %71 : vector<16x128xf32>
    %cst_32 = arith.constant 0.000000e+00 : f32
    %cst_33 = arith.constant 2.500000e-01 : f32
    %73 = arith.subf %cst_32, %cst_33 : f32
    %cst_34 = arith.constant 2.500000e-01 : f32
    %74 = vector.broadcast %cst_34 : f32 to vector<16x128xf32>
    %75 = vector.broadcast %73 : f32 to vector<16x128xf32>
    %76 = arith.select %72, %74, %75 : vector<16x128xi1>, vector<16x128xf32>
    %77 = arith.subf %44, %76 : vector<16x128xf32>
    %78 = arith.mulf %77, %77 : vector<16x128xf32>
    %79 = arith.addf %46, %78 : vector<16x128xf32>
    %cst_35 = arith.constant 1.000000e+00 : f32
    %80 = vector.broadcast %cst_35 : f32 to vector<16x128xf32>
    %81 = arith.mulf %80, %44 : vector<16x128xf32>
    %82 = math.absf %81 : vector<16x128xf32>
    %cst_36 = arith.constant 0.000000e+00 : f32
    %83 = vector.broadcast %cst_36 : f32 to vector<16x128xf32>
    %84 = arith.subf %83, %82 : vector<16x128xf32>
    %85 = math.exp %84 : vector<16x128xf32>
    %cst_37 = arith.constant 1.000000e+00 : f32
    %86 = vector.broadcast %cst_37 : f32 to vector<16x128xf32>
    %87 = arith.addf %86, %85 : vector<16x128xf32>
    %88 = tpu.reciprocal %87 {approx = true} : vector<16x128xf32> -> vector<16x128xf32>
    %89 = math.log %87 : vector<16x128xf32>
    %90 = arith.mulf %82, %85 : vector<16x128xf32>
    %91 = arith.mulf %90, %88 : vector<16x128xf32>
    %92 = arith.addf %89, %91 : vector<16x128xf32>
    %93 = arith.addf %60, %92 : vector<16x128xf32>
    %94 = arith.mulf %85, %88 : vector<16x128xf32>
    %95 = arith.select %72, %88, %94 : vector<16x128xi1>, vector<16x128xf32>
    %c0_38 = arith.constant 0 : index
    %c4 = arith.constant 4 : index
    %c0_39 = arith.constant 0 : index
    %c0_40 = arith.constant 0 : index
    %96 = vector.load %arg4[%c0_38, %c4, %c0_39, %c0_40] : memref<1x6x8x128xf32, #tpu.memory_space<vmem>>, vector<1x1x8x128xf32>
    %97 = vector.shape_cast %96 : vector<1x1x8x128xf32> to vector<8x128xf32>
    %98 = vector.shape_cast %95 : vector<16x128xf32> to vector<2x8x128xf32>
    %cst_41 = arith.constant dense<0.000000e+00> : vector<8x128xf32>
    %99 = vector.multi_reduction <add>, %98, %cst_41 [0] : vector<2x8x128xf32> to vector<8x128xf32>
    %100 = arith.addf %97, %99 : vector<8x128xf32>
    %c0_42 = arith.constant 0 : index
    %c4_43 = arith.constant 4 : index
    %c0_44 = arith.constant 0 : index
    %c0_45 = arith.constant 0 : index
    %101 = vector.load %arg4[%c0_42, %c4_43, %c0_44, %c0_45] : memref<1x6x8x128xf32, #tpu.memory_space<vmem>>, vector<1x1x8x128xf32>
    %102 = vector.shape_cast %101 : vector<1x1x8x128xf32> to vector<8x128xf32>
    %103 = vector.shape_cast %100 : vector<8x128xf32> to vector<1x1x8x128xf32>
    tpu.vector_store %arg4[%c0_42, %c4_43, %c0_44, %c0_45], %103 {strides = array<i32>} : memref<1x6x8x128xf32, #tpu.memory_space<vmem>>, vector<1x1x8x128xf32>,
    %cst_46 = arith.constant 0.000000e+00 : f32
    %104 = vector.broadcast %cst_46 : f32 to vector<16x128xf32>
    %105 = arith.cmpf oge, %77, %104 : vector<16x128xf32>
    %cst_47 = arith.constant 0.000000e+00 : f32
    %cst_48 = arith.constant 1.250000e-01 : f32
    %106 = arith.subf %cst_47, %cst_48 : f32
    %cst_49 = arith.constant 1.250000e-01 : f32
    %107 = vector.broadcast %cst_49 : f32 to vector<16x128xf32>
    %108 = vector.broadcast %106 : f32 to vector<16x128xf32>
    %109 = arith.select %105, %107, %108 : vector<16x128xi1>, vector<16x128xf32>
    %110 = arith.subf %77, %109 : vector<16x128xf32>
    %111 = arith.mulf %110, %110 : vector<16x128xf32>
    %112 = arith.addf %79, %111 : vector<16x128xf32>
    %cst_50 = arith.constant 5.000000e-01 : f32
    %113 = vector.broadcast %cst_50 : f32 to vector<16x128xf32>
    %114 = arith.mulf %113, %77 : vector<16x128xf32>
    %115 = math.absf %114 : vector<16x128xf32>
    %cst_51 = arith.constant 0.000000e+00 : f32
    %116 = vector.broadcast %cst_51 : f32 to vector<16x128xf32>
    %117 = arith.subf %116, %115 : vector<16x128xf32>
    %118 = math.exp %117 : vector<16x128xf32>
    %cst_52 = arith.constant 1.000000e+00 : f32
    %119 = vector.broadcast %cst_52 : f32 to vector<16x128xf32>
    %120 = arith.addf %119, %118 : vector<16x128xf32>
    %121 = tpu.reciprocal %120 {approx = true} : vector<16x128xf32> -> vector<16x128xf32>
    %122 = math.log %120 : vector<16x128xf32>
    %123 = arith.mulf %115, %118 : vector<16x128xf32>
    %124 = arith.mulf %123, %121 : vector<16x128xf32>
    %125 = arith.addf %122, %124 : vector<16x128xf32>
    %126 = arith.addf %93, %125 : vector<16x128xf32>
    %127 = arith.mulf %118, %121 : vector<16x128xf32>
    %128 = arith.select %105, %121, %127 : vector<16x128xi1>, vector<16x128xf32>
    %c0_53 = arith.constant 0 : index
    %c5 = arith.constant 5 : index
    %c0_54 = arith.constant 0 : index
    %c0_55 = arith.constant 0 : index
    %129 = vector.load %arg4[%c0_53, %c5, %c0_54, %c0_55] : memref<1x6x8x128xf32, #tpu.memory_space<vmem>>, vector<1x1x8x128xf32>
    %130 = vector.shape_cast %129 : vector<1x1x8x128xf32> to vector<8x128xf32>
    %131 = vector.shape_cast %128 : vector<16x128xf32> to vector<2x8x128xf32>
    %cst_56 = arith.constant dense<0.000000e+00> : vector<8x128xf32>
    %132 = vector.multi_reduction <add>, %131, %cst_56 [0] : vector<2x8x128xf32> to vector<8x128xf32>
    %133 = arith.addf %130, %132 : vector<8x128xf32>
    %c0_57 = arith.constant 0 : index
    %c5_58 = arith.constant 5 : index
    %c0_59 = arith.constant 0 : index
    %c0_60 = arith.constant 0 : index
    %134 = vector.load %arg4[%c0_57, %c5_58, %c0_59, %c0_60] : memref<1x6x8x128xf32, #tpu.memory_space<vmem>>, vector<1x1x8x128xf32>
    %135 = vector.shape_cast %134 : vector<1x1x8x128xf32> to vector<8x128xf32>
    %136 = vector.shape_cast %133 : vector<8x128xf32> to vector<1x1x8x128xf32>
    tpu.vector_store %arg4[%c0_57, %c5_58, %c0_59, %c0_60], %136 {strides = array<i32>} : memref<1x6x8x128xf32, #tpu.memory_space<vmem>>, vector<1x1x8x128xf32>,
    %137 = arith.subf %6, %110 : vector<16x128xf32>
    %138 = arith.index_cast %4 : i32 to index
    %c0_61 = arith.constant 0 : index
    %139 = vector.load %arg3[%138, %c0_61] : memref<16x128xf32, #tpu.memory_space<vmem>>, vector<16x128xf32>
    tpu.vector_store %arg3[%138, %c0_61], %137 {strides = array<i32>} : memref<16x128xf32, #tpu.memory_space<vmem>>, vector<16x128xf32>,
    %c0_62 = arith.constant 0 : index
    %c0_63 = arith.constant 0 : index
    %c0_64 = arith.constant 0 : index
    %c0_65 = arith.constant 0 : index
    %140 = vector.load %arg4[%c0_62, %c0_63, %c0_64, %c0_65] : memref<1x6x8x128xf32, #tpu.memory_space<vmem>>, vector<1x1x8x128xf32>
    %141 = vector.shape_cast %140 : vector<1x1x8x128xf32> to vector<8x128xf32>
    %142 = vector.shape_cast %112 : vector<16x128xf32> to vector<2x8x128xf32>
    %cst_66 = arith.constant dense<0.000000e+00> : vector<8x128xf32>
    %143 = vector.multi_reduction <add>, %142, %cst_66 [0] : vector<2x8x128xf32> to vector<8x128xf32>
    %144 = arith.addf %141, %143 : vector<8x128xf32>
    %c0_67 = arith.constant 0 : index
    %c0_68 = arith.constant 0 : index
    %c0_69 = arith.constant 0 : index
    %c0_70 = arith.constant 0 : index
    %145 = vector.load %arg4[%c0_67, %c0_68, %c0_69, %c0_70] : memref<1x6x8x128xf32, #tpu.memory_space<vmem>>, vector<1x1x8x128xf32>
    %146 = vector.shape_cast %145 : vector<1x1x8x128xf32> to vector<8x128xf32>
    %147 = vector.shape_cast %144 : vector<8x128xf32> to vector<1x1x8x128xf32>
    tpu.vector_store %arg4[%c0_67, %c0_68, %c0_69, %c0_70], %147 {strides = array<i32>} : memref<1x6x8x128xf32, #tpu.memory_space<vmem>>, vector<1x1x8x128xf32>,
    %c0_71 = arith.constant 0 : index
    %c1 = arith.constant 1 : index
    %c0_72 = arith.constant 0 : index
    %c0_73 = arith.constant 0 : index
    %148 = vector.load %arg4[%c0_71, %c1, %c0_72, %c0_73] : memref<1x6x8x128xf32, #tpu.memory_space<vmem>>, vector<1x1x8x128xf32>
    %149 = vector.shape_cast %148 : vector<1x1x8x128xf32> to vector<8x128xf32>
    %150 = vector.shape_cast %126 : vector<16x128xf32> to vector<2x8x128xf32>
    %cst_74 = arith.constant dense<0.000000e+00> : vector<8x128xf32>
    %151 = vector.multi_reduction <add>, %150, %cst_74 [0] : vector<2x8x128xf32> to vector<8x128xf32>
    %152 = arith.addf %149, %151 : vector<8x128xf32>
    %c0_75 = arith.constant 0 : index
    %c1_76 = arith.constant 1 : index
    %c0_77 = arith.constant 0 : index
    %c0_78 = arith.constant 0 : index
    %153 = vector.load %arg4[%c0_75, %c1_76, %c0_77, %c0_78] : memref<1x6x8x128xf32, #tpu.memory_space<vmem>>, vector<1x1x8x128xf32>
    %154 = vector.shape_cast %153 : vector<1x1x8x128xf32> to vector<8x128xf32>
    %155 = vector.shape_cast %152 : vector<8x128xf32> to vector<1x1x8x128xf32>
    tpu.vector_store %arg4[%c0_75, %c1_76, %c0_77, %c0_78], %155 {strides = array<i32>} : memref<1x6x8x128xf32, #tpu.memory_space<vmem>>, vector<1x1x8x128xf32>,
    %c1_i32 = arith.constant 1 : i32
    return
  }
  func.func @transform_0(%arg0: i32, %arg1: i32) -> (i32, i32) {
    %c2_i32 = arith.constant 2 : i32
    %0 = arith.muli %arg0, %c2_i32 : i32
    %1 = arith.addi %0, %arg1 : i32
    %c0_i32 = arith.constant 0 : i32
    %c0_i32_0 = arith.constant 0 : i32
    return %1, %c0_i32 : i32, i32
  }
  func.func @transform_1(%arg0: i32, %arg1: i32) -> (i32, i32) {
    %c2_i32 = arith.constant 2 : i32
    %0 = arith.muli %arg0, %c2_i32 : i32
    %1 = arith.addi %0, %arg1 : i32
    %c0_i32 = arith.constant 0 : i32
    %c0_i32_0 = arith.constant 0 : i32
    return %1, %c0_i32 : i32, i32
  }
  func.func @transform_2(%arg0: i32, %arg1: i32) -> (i32, i32, i32, i32) {
    %c0_i32 = arith.constant 0 : i32
    %c0_i32_0 = arith.constant 0 : i32
    %c0_i32_1 = arith.constant 0 : i32
    %c0_i32_2 = arith.constant 0 : i32
    return %arg0, %c0_i32, %c0_i32_0, %c0_i32_1 : i32, i32, i32, i32
  }
}

</mosaic_0001>

<bundles_post_ra>
// kernel: tpu_custom_call.1
= control target key start
LH: loop header
LB: loop body
LE: loop exit
PB: predicated region body
PF: predicated region fallthrough
CT: control target
= control target key end

     0   :  { %8 = vsyncpa [#allocation3], 0  ;;  %s1416_s0 = inlined_call_operand.hbm [shape: f32[64,128], index: 0, kind: input, shape index: {}]   ;;  %s1417_s1 = inlined_call_operand.hbm [shape: f32[64,128], index: 1, kind: output, shape index: {0}]   ;;  %s1418_s2 = inlined_call_operand.hbm [shape: f32[2,6,8,128], index: 2, kind: output, shape index: {1}]  }
   0x1   :  { %10 = vsyncpa [#allocation3 + $0x1], 0 }
   0x2   :  { %11 = vsyncpa [#allocation4], 0 }
   0x3   :  { %13 = vsyncpa [#allocation4 + $0x1], 0 }
   0x4   :  { %14 = vsyncpa [#allocation7], 0 }
   0x5   :  { %16 = vsyncpa [#allocation7 + $0x1], 0  ;;  %s965_s9 = smov 0   ;;  %s967_s10 = smov 0  }
   0x6   :  { %s969_s11 = smov 0   ;;  %s971_s12 = smov 0  }
   0x7   :  { %s973_s13 = smov 0   ;;  %s975_s14 = smov 0  }
   0x8   :  { %s977_s15 = smov 0   ;;  %s979_s16 = smov 0  }
   0x9   :  { %s981_s17 = smov 0   ;;  %s983_s18 = smov 0  }
   0xa   :  { %s985_s19 = smov 0  }
   0xb LB: > { %1424 = sst [smem:[#allocation11_spill]] %s916_s14  ;;  %s557_s20 = sadd.s32 4294967295, %s936_s19   ;;  %s936_s19 = sphi %s985_s19, %s22_s19   ;;  %s932_s18 = sphi %s983_s18, %s1446_s18   ;;  %s928_s17 = sphi %s981_s17, %s1445_s17   ;;  %s924_s16 = sphi %s979_s16, %s1444_s16   ;;  %s920_s15 = sphi %s977_s15, %s1443_s15   ;;  %s916_s14 = sphi %s975_s14, %s1442_s14   ;;  %s912_s13 = sphi %s973_s13, %s1451_s13   ;;  %s908_s12 = sphi %s971_s12, %s1450_s12   ;;  %s904_s11 = sphi %s969_s11, %s1449_s11   ;;  %s900_s10 = sphi %s967_s10, %s1448_s10   ;;  %s896_s9 = sphi %s965_s9, %s1447_s9  }
   0xc   : > { %1425 = sst [smem:[#allocation12_spill]] %s928_s17  ;;  %s558_s21 = sadd.s32 4294967294, %s936_s19  }
   0xd   : > { %1426 = sst [smem:[#allocation13_spill]] %s932_s18  ;;  %s31_s22 = sadd.s32 1, %s928_s17 }
   0xe   : > { %s34_s23 = sadd.s32 1, %s932_s18  ;;  %p32_p0 = scmp.ge.s32.totalorder %s31_s22, 2 }
   0xf   : > { %s559_s24 = sshll.u32 %s932_s18, 1  ;;  %s45_s26 = sadd.s32 1, %s916_s14 }
  0x10   : > { %s1026_s25 = sadd.s32 %s928_s17, %s559_s24  ;;  %s1453_s22 = smov (%p32_p0, %s31_s22), 0 }
  0x11   : > { %1427 = sst [smem:[#allocation14_spill]] %s1453_s22  ;;  %s1455_s23 = smov (!%p32_p0, %s34_s23), %s932_s18 }
  0x12   : > { %p52_p1 = scmp.ne.s32.totalorder %s916_s14, %s912_s13  ;;  %p53_p2 = scmp.eq.s32.totalorder %s936_s19, 0 }
  0x13   : > { %p36_p3 = scmp.ge.s32.totalorder %s1455_s23, 2  ;;  %p58_p4 = scmp.ne.s32.totalorder %s912_s13, %s908_s12 }
  0x14   : > { %p1037_p5 = por %p53_p2, %p52_p1  ;;  %p59_p6 = scmp.eq.s32.totalorder %s557_s20, 0 }
  0x15   : > { %s1457_s23 = smov (%p36_p3, %s1455_s23), 0  ;;  %p1047_p8 = scmp.eq.s32.totalorder %s557_s20, 3 }
  0x16   : > { %1429 = sst [smem:[#allocation15_spill]] %s1457_s23  ;;  %p1043_p7 = por %p59_p6, %p58_p4 }
  0x17   : > { %s560_s30 = sshll.u32 %s1457_s23, 1  ;;  %p1052_p9 = scmp.eq.s32.totalorder %s558_s21, 3 }
  0x18   : > { %s41_s4 = sadd.s32 %s560_s30, %s1453_s22  ;;  %p1059_p10 = por %p1047_p8, %p52_p1 }
  0x19   : > { %s42_s6 = ssub.s32 %s1026_s25, %s41_s4  ;;  %p1066_p11 = por %p1052_p9, %p58_p4 }
  0x1a   : > { %p43_p12 = scmp.eq.s32.totalorder %s42_s6, 0  ;;  %s98_s8 = ssub.s32 %s932_s18, %s1457_s23 }
  0x1b   : > { %s1434_s7 = scalar_select %p1066_p11, 1, 0 }
  0x1c   : > { %p99_p13 = scmp.eq.s32.totalorder %s98_s8, 0  ;;  %s101_s20 = sadd.s32 1, %s904_s11 }
  0x1d   : > { %s1074_s21 = scalar_select %p43_p12, %s916_s14, %s45_s26  }
  0x1e   : > { %s1077_s24 = scalar_select %p99_p13, %s904_s11, %s101_s20  }
  0x1f   : > { %1435 = sst [smem:[#allocation16_spill]] %s1074_s21  ;;  %p111_p0 = scmp.ne.s32.totalorder %s904_s11, %s900_s10 }
  0x20   : > { %p117_p1 = scmp.ne.s32.totalorder %s900_s10, %s896_s9  ;;  %p611_p2 = scmp.lt.s32.totalorder %s936_s19, 4 }
  0x21   : > { %p1086_p3 = por %p111_p0, %p1047_p8  ;;  %s138_s6 = sand.u32 1, %s916_s14  }
  0x22   : > { %p1092_p4 = por %p117_p1, %p1052_p9  ;;  %s590_s8 = sshll.u32 %s1026_s25, 8 }
  0x23   : > { %s565_s23 = sshll.u32 %s138_s6, 4  ;;  %s150_s20 = scalar_lea.hbm %s1416_s0, %s590_s8 }
  0x24   : > { %s1437_s4 = scalar_select %p1092_p4, 1, 0 }
  0x25   : > { %s142_s18 = scalar_lea.vmem [#allocation2], %s565_s23  ;;  %p1103_p6 = pnand %p611_p2, %p1037_p5 }
  0x26   : > { %s151_s17 = sshll.u32 %s142_s18, 4  ;;  %s139_s3 = scalar_lea.sflag [#allocation3], %s138_s6  ;;  %s152_s17 = int_to_ptr.vmem [resolvable:$true] %s151_s17 }
  0x27   : > { %p760_p8 = pneg %p1103_p6  ;;  %s771_s21 = scalar_lea.vmem %s152_s17, 256 }
  0x28   : > { %p772_p9 = scmp.ne.s32.totalorder %s152_s17, %s771_s21  ;;  %s938_s25 = smov [#allocation2]  }
  0x29   : > { %s776_s14 = sshll.u32 %s938_s25, 4  ;;  %s777_s14 = int_to_ptr.vmem [resolvable:$false] %s776_s14 }
  0x2a   : > { %p774_p12 = pnand %p772_p9, %p760_p8  ;;  %s778_s22 = scalar_lea.vmem %s777_s14, 512 }
  0x2b   : > { %p779_p0 = scmp.lt.s32.totalorder %s152_s17, %s777_s14  ;;  %p780_p1 = scmp.lt.s32.totalorder %s778_s22, %s771_s21 }
  0x2c   : > { %p775_p13 = pneg %p774_p12 }
  0x2d   : > { %p781_p4 = por %p780_p1, %p779_p0 }
  0x2f   : > { %p782_p5 = pnand %p781_p4, %p775_p13 }
  0x31   : > { %785 = shalt.err (!%p782_p5)
}
  0x32   : > { %s939_s18 = smov 128   ;;  %s940_s23 = smov 8  }
  0x33   : > { %603 = dma.hbm_to_vmem [thread:$0]  (!%p1103_p6), %s150_s20, 256, %s152_s17, %s139_s3, %s939_s18, %s939_s18, %s940_s23  }
  0x34   : > { %p569_p2 = scmp.ge.s32.totalorder %s936_s19, 1  ;;  %p159_p11 = scmp.lt.s32.totalorder %s936_s19, 5 }
  0x36   : > { %p160_p8 = pnand %p569_p2, %p159_p11 }
  0x37   : > { %s1114_s27 = sand.u32 (!%p160_p8), 1, %s912_s13  }
  0x38   : > { %163 = sbr.rel (%p160_p8) target bundleno = 166 (0xa6), region = 24  ;;  %s570_s14 = sshll.u32 (!%p160_p8), %s1114_s27, 4 }
  0x39   : > { %s166_s21 = scalar_lea.sflag (!%p160_p8), [#allocation3], %s1114_s27  ;;  %s169_s6 = scalar_lea.vmem (!%p160_p8), [#allocation2], %s570_s14 }
  0x3d   : > { %883 = dma.done.wait (%p1043_p7), %s166_s21, 256  }
  0x3e   : > { %885 = vsyncadd (%p1043_p7), %s166_s21, 4294967040  ;;  %s192_s17 = sand.u32 1, %s900_s10   ;;  %s1125_s26 = scalar_lea.vmem [#allocation5], %s570_s14 }
  0x3f   : > { %s592_s8 = smul.u32 48, %s192_s17  ;;  %p572_p11 = scmp.ne.s32.totalorder %s920_s15, 0 }
  0x41   : > { %s1127_s20 = scalar_lea.vmem [#allocation6], %s592_s8  ;;  %204 = sbr.rel (%p572_p11) target bundleno = 74 (0x4a), region = 32 }
  0x46   : > { %v941_v0 = vmov 0.0  }
  0x47   : > { %205 = vst [vmem:[%s1127_s20] sm:$0xff] %v941_v0  ;;  %206 = vst [vmem:[%s1127_s20 + $0x8] sm:$0xff] %v941_v0 }
  0x48   : > { %207 = vst [vmem:[%s1127_s20 + $0x10] sm:$0xff] %v941_v0  ;;  %208 = vst [vmem:[%s1127_s20 + $0x18] sm:$0xff] %v941_v0 }
  0x49   : > { %209 = vst [vmem:[%s1127_s20 + $0x20] sm:$0xff] %v941_v0  ;;  %210 = vst [vmem:[%s1127_s20 + $0x28] sm:$0xff] %v941_v0 }
  0x4a PF: > { %v1136_v1 = vld [vmem:[%s169_s6] sm:$0xff]  ;;  %v1138_v2 = vld [vmem:[%s169_s6 + $0x8] sm:$0xff]  ;;  %v942_v5 = vmov -1.0   ;;  %v943_v20 = vmov -0.5   ;;  %s584_s28 = sshll.u32 %s924_s16, 1  ;;  %v944_v37 = vmov -0.25  }
  0x4b   : > { %vm213_vm0 = vcmp.ge.f32.partialorder %v1136_v1, 0.0  ;;  %vm214_vm1 = vcmp.ge.f32.partialorder %v1138_v2, 0.0  ;;  %v1143_v3 = vmul.f32 4.0, %v1136_v1  ;;  %v1146_v4 = vmul.f32 4.0, %v1138_v2  ;;  %s414_s29 = sadd.s32 %s920_s15, %s584_s28  ;;  %s421_s3 = sshll.u32 %s1125_s26, 4  ;;  %s1245_s3 = int_to_ptr.vmem [resolvable:$true] %s421_s3 }
  0x4c   : > { %v215_v6 = vsel %vm213_vm0, 1.0, %v942_v5  ;;  %v216_v7 = vsel %vm214_vm1, 1.0, %v942_v5  ;;  %v945_v49 = vmov -0.125   ;;  %s591_s15 = sshll.u32 %s414_s29, 8  ;;  %s401_s23 = scalar_lea.sflag [#allocation4], %s1114_s27 }
  0x4d   : > { %v1153_v8 = vsub.f32 %v1136_v1, %v215_v6  ;;  %v1156_v9 = vsub.f32 %v1138_v2, %v216_v7  ;;  %v223_v10 = vand.u32 2147483647, %v1143_v3  ;;  %v224_v11 = vand.u32 2147483647, %v1146_v4  ;;  %s1243_s18 = scalar_lea.hbm %s1417_s1, %s591_s15  ;;  %s786_s14 = scalar_lea.vmem %s1245_s3, 256 }
  0x4e   : > { %p787_p7 = scmp.ne.s32.totalorder %s1245_s3, %s786_s14  ;;  %s946_s21 = smov [#allocation5]  }
  0x4f   : > { %v225_v12 = vsub.f32 0.0, %v223_v10  ;;  %v226_v13 = vsub.f32 0.0, %v224_v11  ;;  %v1165_v14 = vmul.f32 2.0, %v1153_v8  ;;  %v1168_v15 = vmul.f32 2.0, %v1156_v9  ;;  %s790_s6 = sshll.u32 %s946_s21, 4  ;;  %s791_s6 = int_to_ptr.vmem [resolvable:$false] %s790_s6 }
  0x50   : > { %vm254_vm2 = vcmp.ge.f32.partialorder %v1153_v8, 0.0  ;;  %vm255_vm3 = vcmp.ge.f32.partialorder %v1156_v9, 0.0  ;;  %v219_v27 = vmul.f32 %v1153_v8, %v1153_v8  ;;  %v220_v28 = vmul.f32 %v1156_v9, %v1156_v9  ;;  %p788_p4 = pnand %p787_p7, %p1059_p10  ;;  %s792_s8 = scalar_lea.vmem %s791_s6, 512 }
  0x51   : > { %v227_v16 = vmul.f32 1.442695, %v225_v12  ;;  %v229_v17 = vmul.f32 1.442695, %v226_v13  ;;  %v266_v18 = vand.u32 2147483647, %v1165_v14  ;;  %p793_p9 = scmp.lt.s32.totalorder %s1245_s3, %s791_s6  ;;  %p794_p12 = scmp.lt.s32.totalorder %s792_s8, %s786_s14 }
  0x52   : > { %v267_v19 = vand.u32 2147483647, %v1168_v15  ;;  %v256_v21 = vsel %vm254_vm2, 0.5, %v943_v20  ;;  %v257_v22 = vsel %vm255_vm3, 0.5, %v943_v20  ;;  %v391_v20 = vld [vmem:[%s1127_s20] sm:$0xff]  ;;  %p789_p6 = pneg %p788_p4 }
  0x53   : > { %710 = vpow2.f32 %v227_v16  ;;  %v268_v23 = vsub.f32 0.0, %v266_v18  ;;  %v1181_v24 = vsub.f32 %v1153_v8, %v256_v21  ;;  %v1184_v25 = vsub.f32 %v1156_v9, %v257_v22  ;;  %p795_p13 = por %p794_p12, %p793_p9 }
  0x54   : > { %712 = vpow2.f32 %v229_v17  ;;  %v269_v26 = vsub.f32 0.0, %v267_v19 }
  0x55   : > { %v270_v29 = vmul.f32 1.442695, %v268_v23  ;;  %v309_v30 = vand.u32 2147483647, %v1181_v24  ;;  %v310_v31 = vand.u32 2147483647, %v1184_v25  ;;  %v260_v32 = vmul.f32 %v1181_v24, %v1181_v24  ;;  %p796_p0 = pnand %p795_p13, %p789_p6 }
  0x56   : > { %v272_v33 = vmul.f32 1.442695, %v269_v26  ;;  %vm299_vm4 = vcmp.ge.f32.partialorder %v1181_v24, 0.0  ;;  %vm300_vm5 = vcmp.ge.f32.partialorder %v1184_v25, 0.0  ;;  %v261_v34 = vmul.f32 %v1184_v25, %v1184_v25 }
  0x57   : > { %714 = vpow2.f32 %v270_v29  ;;  %v311_v35 = vsub.f32 0.0, %v309_v30  ;;  %v312_v36 = vsub.f32 0.0, %v310_v31  ;;  %v301_v38 = vsel %vm299_vm4, 0.25, %v944_v37 }
  0x58   : > { %716 = vpow2.f32 %v272_v33  ;;  %v302_v39 = vsel %vm300_vm5, 0.25, %v944_v37  ;;  %v1210_v40 = vsub.f32 %v1181_v24, %v301_v38  ;;  %v262_v44 = vadd.f32 %v260_v32, %v219_v27 }
  0x59   : > { %v313_v41 = vmul.f32 1.442695, %v311_v35  ;;  %v315_v42 = vmul.f32 1.442695, %v312_v36  ;;  %v1214_v43 = vsub.f32 %v1184_v25, %v302_v39  ;;  %v263_v46 = vadd.f32 %v261_v34, %v220_v28 }
  0x5a   : > { %v1217_v45 = vmul.f32 0.5, %v1210_v40  ;;  %vm342_vm6 = vcmp.ge.f32.partialorder %v1210_v40, 0.0  ;;  %v305_v47 = vmul.f32 %v1210_v40, %v1210_v40 }
  0x5b   : > { %718 = vpow2.f32 %v313_v41  ;;  %v1223_v48 = vmul.f32 0.5, %v1214_v43  ;;  %vm343_vm7 = vcmp.ge.f32.partialorder %v1214_v43, 0.0  ;;  %v344_v50 = vsel %vm342_vm6, 0.125, %v945_v49 }
  0x5c   : > { %720 = vpow2.f32 %v315_v42  ;;  %v354_v51 = vand.u32 2147483647, %v1217_v45  ;;  %v346_v52 = vsub.f32 %v1210_v40, %v344_v50  ;;  %v345_v53 = vsel %vm343_vm7, 0.125, %v945_v49 }
  0x5d   : > { %v355_v54 = vand.u32 2147483647, %v1223_v48  ;;  %v347_v55 = vsub.f32 %v1214_v43, %v345_v53  ;;  %v306_v56 = vmul.f32 %v1214_v43, %v1214_v43  ;;  %v307_v57 = vadd.f32 %v305_v47, %v262_v44 }
  0x5e   : > { %v356_v58 = vsub.f32 0.0, %v354_v51  ;;  %v348_v59 = vmul.f32 %v346_v52, %v346_v52  ;;  %v387_v60 = vsub.f32 %v1136_v1, %v346_v52 }
  0x5f   : > { %v357_v61 = vsub.f32 0.0, %v355_v54  ;;  %v349_v62 = vmul.f32 %v347_v55, %v347_v55  ;;  %v388_v63 = vsub.f32 %v1138_v2, %v347_v55  ;;  %v308_v0 = vadd.f32 %v306_v56, %v263_v46 }
  0x60   : > { %v1250_v5 = vpop.eup %710  ;;  %v358_v6 = vmul.f32 1.442695, %v356_v58  ;;  %389 = vst [vmem:[%s1125_s26] sm:$0xff] %v387_v60  ;;  %v350_v7 = vadd.f32 %v348_v59, %v307_v57 }
  0x61   : > { %v1253_v12 = vpop.eup %712  ;;  %v231_v13 = vadd.f32 1.0, %v1250_v5  ;;  %v360_v16 = vmul.f32 1.442695, %v357_v61  ;;  %390 = vst [vmem:[%s1125_s26 + $0x8] sm:$0xff] %v388_v63  ;;  %v351_v17 = vadd.f32 %v349_v62, %v308_v0 }
  0x62   : > { %v232_v21 = vadd.f32 1.0, %v1253_v12  ;;  %722 = vpow2.f32 %v358_v6 }
  0x63   : > { %799 = shalt.err (!%p796_p0)
}
  0x64   : > { %s800_s26 = scalar_lea.hbm %s1243_s18, 256  ;;  %s804_s15 = scalar_lea.hbm %s1417_s1, 1024 }
  0x65   : > { %p801_p1 = scmp.ne.s32.totalorder %s1243_s18, %s800_s26  ;;  %p805_p8 = scmp.lt.s32.totalorder %s1243_s18, %s1417_s1 }
  0x66   : > { %p806_p11 = scmp.lt.s32.totalorder %s804_s15, %s800_s26 }
  0x67   : > { %p802_p5 = pnand %p801_p1, %p1059_p10 }
  0x68   : > { %p807_p7 = por %p806_p11, %p805_p8 }
  0x69   : > { %p803_p2 = pneg %p802_p5 }
  0x6b   : > { %p808_p4 = pnand %p807_p7, %p803_p2 }
  0x6d   : > { %811 = shalt.err (!%p808_p4)
}
  0x6e   : > { %s947_s14 = smov 128   ;;  %s948_s21 = smov 8   ;;  %724 = vrcp.f32 %v231_v13  ;;  %v392_v22 = vadd.f32 %v351_v17, %v350_v7  ;;  %v715_v23 = vpop.eup %714  ;;  %v239_v42 = vmul.f32 %v1250_v5, %v223_v10  ;;  %v573_v10 = vld [vmem:[%s1127_s20 + $0x10] sm:$0xff]  ;;  %v240_v55 = vmul.f32 %v1253_v12, %v224_v11  ;;  %v575_v63 = vld [vmem:[%s1127_s20 + $0x18] sm:$0xff]  ;;  %v581_v40 = vld [vmem:[%s1127_s20 + $0x8] sm:$0xff] }
  0x6f   : > { %596 = dma.vmem_to_hbm [thread:$0]  (%p1059_p10), %s1245_s3, 256, %s1243_s18, %s401_s23, %s947_s14, %s947_s14, %s948_s21   ;;  %726 = vrcp.f32 %v232_v21  ;;  %v717_v26 = vpop.eup %716  ;;  %v274_v27 = vadd.f32 1.0, %v715_v23  ;;  %v282_v47 = vmul.f32 %v715_v23, %v266_v18 }
  0x70   : > { %728 = vpow2.f32 %v360_v16  ;;  %v393_v28 = vadd.f32 %v392_v22, %v391_v20  ;;  %v275_v29 = vadd.f32 1.0, %v717_v26  ;;  %v719_v32 = vpop.eup %718  ;;  %v283_v14 = vmul.f32 %v717_v26, %v267_v19  ;;  %s593_s5 = smul.u32 768, %s924_s16  ;;  %s437_s27 = sshll.u32 %s1127_s20, 4  ;;  %s1348_s27 = int_to_ptr.vmem [resolvable:$true] %s437_s27 }
  0x71   : > { %730 = vlog2.f32 %v231_v13  ;;  %v721_v33 = vpop.eup %720  ;;  %v317_v34 = vadd.f32 1.0, %v719_v32  ;;  %v325_v18 = vmul.f32 %v719_v32, %v309_v30  ;;  %s406_s6 = scalar_lea.sflag [#allocation7], %s192_s17  ;;  %s812_s8 = scalar_lea.vmem %s1348_s27, 768 }
  0x72   : > { %732 = vrcp.f32 %v274_v27  ;;  %394 = vst [vmem:[%s1127_s20] sm:$0xff] %v393_v28  ;;  %v318_v35 = vadd.f32 1.0, %v721_v33  ;;  %v1286_v36 = vpop.eup %722  ;;  %v326_v19 = vmul.f32 %v721_v33, %v310_v31  ;;  %s1346_s23 = scalar_lea.hbm %s1418_s2, %s593_s5  ;;  %p813_p10 = scmp.ne.s32.totalorder %s1348_s27, %s812_s8 }
  0x73   : > { %734 = vrcp.f32 %v275_v29  ;;  %v362_v38 = vadd.f32 1.0, %v1286_v36  ;;  %s949_s16 = smov [#allocation6]  }
  0x74   : > { %736 = vlog2.f32 %v232_v21  ;;  %p814_p6 = pnand %p813_p10, %p1086_p3  ;;  %s816_s26 = sshll.u32 %s949_s16, 4  ;;  %s817_s26 = int_to_ptr.vmem [resolvable:$false] %s816_s26 }
  0x75   : > { %738 = vlog2.f32 %v274_v27  ;;  %v370_v27 = vmul.f32 %v1286_v36, %v354_v51  ;;  %s818_s28 = scalar_lea.vmem %s817_s26, 1536  ;;  %p819_p12 = scmp.lt.s32.totalorder %s1348_s27, %s817_s26 }
  0x76   : > { %740 = vrcp.f32 %v317_v34  ;;  %p815_p9 = pneg %p814_p6  ;;  %p820_p13 = scmp.lt.s32.totalorder %s818_s28, %s812_s8 }
  0x77   : > { %742 = vrcp.f32 %v318_v35 }
  0x78   : > { %744 = vlog2.f32 %v275_v29  ;;  %p821_p0 = por %p820_p13, %p819_p12 }
  0x79   : > { %746 = vlog2.f32 %v317_v34 }
  0x7a   : > { %748 = vlog2.f32 %v318_v35  ;;  %p822_p1 = pnand %p821_p0, %p815_p9 }
  0x7b   : > { %v725_v37 = vpop.eup %724  ;;  %750 = vrcp.f32 %v362_v38 }
  0x7c   : > { %v727_v39 = vpop.eup %726  ;;  %v245_v41 = vmul.f32 %v725_v37, %v1250_v5  ;;  %752 = vlog2.f32 %v362_v38  ;;  %v241_v58 = vmul.f32 %v725_v37, %v239_v42 }
  0x7d   : > { %v1293_v44 = vpop.eup %728  ;;  %v246_v46 = vmul.f32 %v727_v39, %v1253_v12  ;;  %v242_v5 = vmul.f32 %v727_v39, %v240_v55 }
  0x7e   : > { %v731_v49 = vpop.eup %730  ;;  %v247_v50 = vsel %vm213_vm0, %v725_v37, %v245_v41  ;;  %v363_v52 = vadd.f32 1.0, %v1293_v44  ;;  %v371_v45 = vmul.f32 %v1293_v44, %v355_v54 }
  0x7f   : > { %v733_v53 = vpop.eup %732  ;;  %v248_v3 = vsel %vm214_vm1, %v727_v39, %v246_v46  ;;  %v236_v60 = vmul.f32 0.6931472, %v731_v49 }
  0x80   : > { %v735_v1 = vpop.eup %734  ;;  %v251_v56 = vadd.f32 %v248_v3, %v247_v50  ;;  %v290_v57 = vmul.f32 %v733_v53, %v715_v23  ;;  %754 = vrcp.f32 %v363_v52  ;;  %v284_v61 = vmul.f32 %v733_v53, %v282_v47 }
  0x81   : > { %v737_v59 = vpop.eup %736  ;;  %v291_v2 = vmul.f32 %v735_v1, %v717_v26  ;;  %756 = vlog2.f32 %v363_v52  ;;  %v285_v16 = vmul.f32 %v735_v1, %v283_v14  ;;  %v243_v20 = vadd.f32 %v241_v58, %v236_v60 }
  0x82   : > { %v739_v4 = vpop.eup %738  ;;  %v252_v11 = vadd.f32 %v573_v10, %v251_v56  ;;  %v292_v15 = vsel %vm254_vm2, %v733_v53, %v290_v57  ;;  %v238_v0 = vmul.f32 0.6931472, %v737_v59  ;;  %v579_v56 = vld [vmem:[%s1127_s20 + $0x28] sm:$0xff] }
  0x83   : > { %v741_v30 = vpop.eup %740  ;;  %v293_v62 = vsel %vm255_vm3, %v735_v1, %v291_v2  ;;  %v279_v6 = vmul.f32 0.6931472, %v739_v4 }
  0x84   : > { %v743_v7 = vpop.eup %742  ;;  %574 = vst [vmem:[%s1127_s20 + $0x10] sm:$0xff] %v252_v11  ;;  %v296_v12 = vadd.f32 %v293_v62, %v292_v15  ;;  %v333_v13 = vmul.f32 %v741_v30, %v719_v32  ;;  %v327_v31 = vmul.f32 %v741_v30, %v325_v18  ;;  %v577_v32 = vld [vmem:[%s1127_s20 + $0x20] sm:$0xff]  ;;  %v244_v34 = vadd.f32 %v242_v5, %v238_v0 }
  0x85   : > { %v745_v17 = vpop.eup %744  ;;  %v334_v8 = vmul.f32 %v743_v7, %v721_v33  ;;  %v286_v21 = vadd.f32 %v284_v61, %v279_v6  ;;  %v328_v35 = vmul.f32 %v743_v7, %v326_v19 }
  0x86   : > { %v747_v22 = vpop.eup %746  ;;  %v297_v23 = vadd.f32 %v575_v63, %v296_v12  ;;  %v335_v9 = vsel %vm299_vm4, %v741_v30, %v333_v13  ;;  %v281_v26 = vmul.f32 0.6931472, %v745_v17 }
  0x87   : > { %v749_v28 = vpop.eup %748  ;;  %v336_v29 = vsel %vm300_vm5, %v743_v7, %v334_v8  ;;  %v322_v33 = vmul.f32 0.6931472, %v747_v22  ;;  %v288_v24 = vadd.f32 %v286_v21, %v243_v20 }
  0x88   : > { %576 = vst [vmem:[%s1127_s20 + $0x18] sm:$0xff] %v297_v23  ;;  %v339_v37 = vadd.f32 %v336_v29, %v335_v9  ;;  %v287_v38 = vadd.f32 %v285_v16, %v281_v26  ;;  %v324_v39 = vmul.f32 0.6931472, %v749_v28  ;;  %v751_v42 = vpop.eup %750 }
  0x89   : > { %v329_v41 = vadd.f32 %v327_v31, %v322_v33  ;;  %v753_v51 = vpop.eup %752  ;;  %v378_v25 = vmul.f32 %v751_v42, %v1286_v36  ;;  %v372_v50 = vmul.f32 %v751_v42, %v370_v27 }
  0x8a   : > { %v340_v46 = vadd.f32 %v577_v32, %v339_v37  ;;  %v289_v47 = vadd.f32 %v287_v38, %v244_v34  ;;  %v330_v49 = vadd.f32 %v328_v35, %v324_v39  ;;  %v367_v52 = vmul.f32 0.6931472, %v753_v51 }
  0x8b   : > { %v331_v3 = vadd.f32 %v329_v41, %v288_v24  ;;  %v380_v48 = vsel %vm342_vm6, %v751_v42, %v378_v25 }
  0x8c   : > { %578 = vst [vmem:[%s1127_s20 + $0x20] sm:$0xff] %v340_v46  ;;  %v374_v36 = vadd.f32 %v372_v50, %v367_v52  ;;  %v332_v14 = vadd.f32 %v330_v49, %v289_v47 }
  0x8d   : > { %v755_v53 = vpop.eup %754 }
  0x8e   : > { %v757_v10 = vpop.eup %756  ;;  %v379_v55 = vmul.f32 %v755_v53, %v1293_v44  ;;  %v373_v54 = vmul.f32 %v755_v53, %v371_v45  ;;  %v376_v59 = vadd.f32 %v374_v36, %v331_v3 }
  0x8f   : > { %v369_v18 = vmul.f32 0.6931472, %v757_v10 }
  0x90   : > { %v381_v1 = vsel %vm343_vm7, %v755_v53, %v379_v55 }
  0x91   : > { %v384_v57 = vadd.f32 %v381_v1, %v380_v48  ;;  %v375_v58 = vadd.f32 %v373_v54, %v369_v18 }
  0x93   : > { %v385_v2 = vadd.f32 %v579_v56, %v384_v57  ;;  %v377_v44 = vadd.f32 %v375_v58, %v332_v14 }
  0x95   : > { %580 = vst [vmem:[%s1127_s20 + $0x28] sm:$0xff] %v385_v2  ;;  %v397_v60 = vadd.f32 %v377_v44, %v376_v59 }
  0x97   : > { %v398_v61 = vadd.f32 %v581_v40, %v397_v60 }
  0x99   : > { %582 = vst [vmem:[%s1127_s20 + $0x8] sm:$0xff] %v398_v61 }
  0x9a   : > { %825 = shalt.err (!%p822_p1)
}
  0x9b   : > { %s826_s20 = scalar_lea.hbm %s1346_s23, 768  ;;  %s830_s15 = scalar_lea.hbm %s1418_s2, 1536 }
  0x9c   : > { %p827_p5 = scmp.ne.s32.totalorder %s1346_s23, %s826_s20  ;;  %p831_p11 = scmp.lt.s32.totalorder %s1346_s23, %s1418_s2 }
  0x9d   : > { %p832_p7 = scmp.lt.s32.totalorder %s830_s15, %s826_s20 }
  0x9e   : > { %p828_p2 = pnand %p827_p5, %p1086_p3 }
  0x9f   : > { %p833_p4 = por %p832_p7, %p831_p11 }
  0xa0   : > { %p829_p8 = pneg %p828_p2 }
  0xa2   : > { %p834_p10 = pnand %p833_p4, %p829_p8 }
  0xa4   : > { %837 = shalt.err (!%p834_p10)
}
  0xa5   : > { %597 = dma.vmem_to_hbm [thread:$0]  (%p1086_p3), %s1348_s27, 768, %s1346_s23, %s406_s6, %s947_s14, %s947_s14, %s948_s21  }
  0xa6 PF: > { %p612_p6 = scmp.ge.s32.totalorder %s936_s19, 2  ;;  %s452_s5 = sand.u32 1, %s908_s12  }
  0xa7   : > { %p1439_p9 = scmp.ne.s32.totalorder %s1434_s7, 0  ;;  %s453_s3 = scalar_lea.sflag [#allocation4], %s452_s5 }
  0xa9   : > { %p605_p12 = pnand %p612_p6, %p1439_p9 }
  0xab   : > { %p606_p13 = pneg %p605_p12 }
  0xad   : > { %887 = dma.done.wait (%p606_p13), %s453_s3, 256  }
  0xae   : > { %889 = vsyncadd (%p606_p13), %s453_s3, 4294967040  ;;  %s461_s30 = sand.u32 1, %s896_s9   ;;  %p1440_p0 = scmp.ne.s32.totalorder %s1437_s4, 0 }
  0xaf   : > { %s462_s18 = scalar_lea.sflag [#allocation7], %s461_s30 }
  0xb0   : > { %p608_p1 = pnand %p612_p6, %p1440_p0 }
  0xb2   : > { %p609_p5 = pneg %p608_p1 }
  0xb4   : > { %891 = dma.done.wait (%p609_p5), %s462_s18, 768  }
  0xb5   : > { %893 = vsyncadd (%p609_p5), %s462_s18, 4294966528  ;;  %s22_s19 = sadd.s32 1, %s936_s19   ;;  %s1441_s7 = sld [smem:[#allocation11_spill]] }
  0xb6   : > { %p19_p3 = scmp.ge.s32.totalorder %s22_s19, 6   ;;  %s1442_s14 = sld [smem:[#allocation16_spill]] }
  0xb7   : > { %s1443_s15 = sld [smem:[#allocation12_spill]]  ;;  %s1447_s9 = smov %s900_s10 }
  0xb8   : > { %s1444_s16 = sld [smem:[#allocation13_spill]]  ;;  %s1448_s10 = smov %s904_s11 }
  0xb9   : > { %s1445_s17 = sld [smem:[#allocation14_spill]]  ;;  %s1449_s11 = smov %s1077_s24 }
  0xba   : > { %s1446_s18 = sld [smem:[#allocation15_spill]]  ;;  %s1450_s12 = smov %s912_s13 }
  0xbb   : > { %s1451_s13 = smov %s1441_s7  ;;  %21 = sbr.rel (!%p19_p3) target bundleno = 11 (0xb), region = 95 }
  0xc0   :  { %467 = vsyncpa [#allocation3], 1 }
  0xc1   :  { %469 = vsyncpa [#allocation3 + $0x1], 1 }
  0xc2   :  { %470 = vsyncpa [#allocation4], 1 }
  0xc3   :  { %472 = vsyncpa [#allocation4 + $0x1], 1 }
  0xc4   :  { %473 = vsyncpa [#allocation7], 1 }
  0xc5   :  { %475 = vsyncpa [#allocation7 + $0x1], 1 }

</bundles_post_ra>
